<compile_context>
chip_gen: v5e
topology: v5e:2x2
jax: 0.10.0
libtpu: 0.0.40
codegen_flags: <defaults>
</compile_context>

<pallas_src>
import jax
import jax.numpy as jnp
from jax.experimental import pallas as pl
from jax.experimental.pallas import tpu as pltpu

INPUT_SIZE = 4    # ['Year', 'Present_Price', 'Kms_Driven', 'Owner']
OUTPUT_SIZE = 1   # ['Selling_Price']

LANE = 128        # TPU lane width (last-dim alignment unit)
SUBLANE = 8       # TPU sublane width (second-to-last-dim alignment unit)


def _round_up(n, m):
    return ((n + m - 1) // m) * m


def _linear_kernel(wb_ref, xt_ref, o_ref):
    # wb_ref: SMEM (5,) f32               = [w0, w1, w2, w3, b]
    # xt_ref: VMEM (4, TILE_R, 128) f32   feature-major, batch dense on (sublane, lane)
    # o_ref:  VMEM (TILE_R, 128) f32      fully dense output tile
    o_ref[...] = (
        xt_ref[0] * wb_ref[0]
        + xt_ref[1] * wb_ref[1]
        + xt_ref[2] * wb_ref[2]
        + xt_ref[3] * wb_ref[3]
        + wb_ref[4]
    )


def _pick_tile_rows(num_rows, tile_rows):
    """Per-step row tile: multiple of 8, and >= 2 grid steps when data allows."""
    if num_rows <= SUBLANE:
        return num_rows                      # block dim == full array dim is legal
    tile_rows = _round_up(max(tile_rows, SUBLANE), SUBLANE)
    # Cap at ~half the rows so the ("parallel",) grid has >= 2 steps and both
    # v7x TensorCores get work.
    half = _round_up(pl.cdiv(num_rows, 2), SUBLANE)
    return max(SUBLANE, min(tile_rows, half))


def _pack_params(weight, bias):
    assert weight.shape == (OUTPUT_SIZE, INPUT_SIZE)
    assert bias.shape == (OUTPUT_SIZE,)
    return jnp.concatenate([weight.reshape(-1), bias.reshape(-1)]).astype(jnp.float32)


def _linear_pallas(wb, xt3, *, tile_rows):
    """Core call. xt3: (4, R, 128) f32 feature-major slab -> (R, 128) f32."""
    feat, R, lanes = xt3.shape
    assert feat == INPUT_SIZE and lanes == LANE
    tile = _pick_tile_rows(R, tile_rows)
    grid = (pl.cdiv(R, tile),)               # no pad: last partial block is masked

    return pl.pallas_call(
        _linear_kernel,
        out_shape=jax.ShapeDtypeStruct((R, LANE), jnp.float32),
        grid=grid,
        in_specs=[
            # 5 parameter scalars, whole array resident in SMEM.
            pl.BlockSpec(memory_space=pltpu.MemorySpace.SMEM),
            # (4, tile, 128) input slab: leading dim equals the full feature
            # axis; last two dims are (multiple-of-8, 128) -> dense DMA.
            # TODO(synk): if the input DMA is still exposed on v7x, try
            #             pipeline_mode=pl.Buffered(3) on this spec.
            pl.BlockSpec((INPUT_SIZE, tile, LANE), lambda i: (0, i, 0)),
        ],
        out_specs=pl.BlockSpec((tile, LANE), lambda i: (i, 0)),
        compiler_params=pltpu.CompilerParams(
            dimension_semantics=("parallel",),
            # Let XLA fuse the (pad +) transpose + reshape producing the
            # feature-major operand straight into the pallas call instead of
            # materializing separate intermediates.
            allow_input_fusion=[False, True],
        ),
    )(wb, xt3)


def cars_linear_feature_major(xt3, weight, bias, *, tile_rows=1024):
    """Zero-copy fast path: xt3 already in feature-major (4, R, 128) layout.

    Returns predictions as a dense (R, 128) slab (row r, lane l = batch element
    r * 128 + l).  Use this when the data pipeline keeps the feature-major
    layout upstream, so no transpose / pad / slice touches HBM at all.
    """
    wb = _pack_params(weight, bias)
    return _linear_pallas(wb, xt3, tile_rows=tile_rows)


def cars_model_forward(x, weight, bias, *, tile_rows=1024):
    """Equivalent of CarsModel.forward: out = x @ weight.T + bias.

    x:      (B, 4) float32
    weight: (1, 4) float32   (nn.Linear weight, out_features x in_features)
    bias:   (1,)   float32
    returns (B, 1) float32
    """
    B, D = x.shape
    assert D == INPUT_SIZE
    wb = _pack_params(weight, bias)

    # Layout plumbing (fused into the pallas operand via allow_input_fusion):
    # (B, 4) -> pad batch to a multiple of 128 -> (4, Bp) -> (4, R, 128).
    R = pl.cdiv(B, LANE)
    Bp = R * LANE
    xf = x.astype(jnp.float32)
    if Bp != B:
        xf = jnp.pad(xf, ((0, Bp - B), (0, 0)))
    xt3 = xf.T.reshape(INPUT_SIZE, R, LANE)

    out = _linear_pallas(wb, xt3, tile_rows=tile_rows)   # (R, 128), fully dense

    # (R, 128) -> (Bp,) is metadata-only; the [:B] slice copies only B*4 bytes
    # and only when B is not a multiple of 128.
    y = out.reshape(Bp)
    if Bp != B:
        y = y[:B]
    return y.reshape(B, OUTPUT_SIZE)


def init_cars_model_params(key):
    """Deterministic init mimicking nn.Linear(4, 1) default (uniform +-1/sqrt(fan_in))."""
    kw, kb = jax.random.split(key)
    bound = 1.0 / (INPUT_SIZE ** 0.5)
    weight = jax.random.uniform(
        kw, (OUTPUT_SIZE, INPUT_SIZE), jnp.float32, minval=-bound, maxval=bound
    )
    bias = jax.random.uniform(
        kb, (OUTPUT_SIZE,), jnp.float32, minval=-bound, maxval=bound
    )
    return weight, bias


if __name__ == "__main__":
    key = jax.random.PRNGKey(0)
    k_param, k_x1, k_x2, k_x3 = jax.random.split(key, 4)

    weight, bias = init_cars_model_params(k_param)

    # 1) Tiny batch: single partial 128-lane block (pad + masked tail exercised).
    B1 = 8
    x1 = jax.random.normal(k_x1, (B1, INPUT_SIZE), dtype=jnp.float32)
    out1 = jax.block_until_ready(cars_model_forward(x1, weight, bias))
    ref1 = x1 @ weight.T + bias
    assert out1.shape == (B1, OUTPUT_SIZE)
    assert jnp.allclose(out1, ref1, atol=1e-5, rtol=1e-5)

    # 2) Batch not a multiple of 128: pad / final-slice path.
    B2 = 1000
    x2 = jax.random.normal(k_x2, (B2, INPUT_SIZE), dtype=jnp.float32)
    out2 = jax.block_until_ready(cars_model_forward(x2, weight, bias))
    ref2 = x2 @ weight.T + bias
    assert out2.shape == (B2, OUTPUT_SIZE)
    assert jnp.allclose(out2, ref2, atol=1e-5, rtol=1e-5)

    # 3) Multi-step parallel grid (small tile_rows forces several grid steps)
    #    plus the zero-copy feature-major entry point.
    B3 = 4096                                 # R = 32 rows of 128 lanes
    x3 = jax.random.normal(k_x3, (B3, INPUT_SIZE), dtype=jnp.float32)
    out3 = jax.block_until_ready(cars_model_forward(x3, weight, bias, tile_rows=8))
    ref3 = x3 @ weight.T + bias
    assert out3.shape == (B3, OUTPUT_SIZE)
    assert jnp.allclose(out3, ref3, atol=1e-5, rtol=1e-5)

    xt3 = x3.T.reshape(INPUT_SIZE, B3 // LANE, LANE)
    out3_fm = jax.block_until_ready(
        cars_linear_feature_major(xt3, weight, bias, tile_rows=8)
    )
    assert out3_fm.shape == (B3 // LANE, LANE)
    assert jnp.allclose(out3_fm.reshape(B3, OUTPUT_SIZE), ref3, atol=1e-5, rtol=1e-5)

    print("KERNEL_OK")
</pallas_src>

<mosaic_0001>
module attributes {stable_mosaic.version = 11 : i64} {
  func.func @_linear_kernel(%arg0: i32, %arg1: memref<5xf32, #tpu.memory_space<smem>>, %arg2: memref<4x1x128xf32, #tpu.memory_space<vmem>>, %arg3: memref<1x128xf32, #tpu.memory_space<vmem>>) attributes {dimension_semantics = [#tpu.dimension_semantics<parallel>], iteration_bounds = array<i64: 1>, scalar_prefetch = 0 : i64, scratch_operands = 0 : i64, tpu.core_type = #tpu.core_type<tc>, window_params = [{transform_indices = @transform_0, window_bounds = array<i64: 5>}, {transform_indices = @transform_1, window_bounds = array<i64: 4, 1, 128>}, {transform_indices = @transform_2, window_bounds = array<i64: 1, 128>}]} {
    %c0 = arith.constant 0 : index
    %c0_0 = arith.constant 0 : index
    %c0_1 = arith.constant 0 : index
    %0 = vector.load %arg2[%c0, %c0_0, %c0_1] : memref<4x1x128xf32, #tpu.memory_space<vmem>>, vector<1x1x128xf32>
    %1 = vector.shape_cast %0 : vector<1x1x128xf32> to vector<1x128xf32>
    %c0_2 = arith.constant 0 : index
    %2 = memref.load %arg1[%c0_2] : memref<5xf32, #tpu.memory_space<smem>>
    %3 = vector.broadcast %2 : f32 to vector<1x128xf32>
    %4 = arith.mulf %1, %3 : vector<1x128xf32>
    %c1 = arith.constant 1 : index
    %c0_3 = arith.constant 0 : index
    %c0_4 = arith.constant 0 : index
    %5 = vector.load %arg2[%c1, %c0_3, %c0_4] : memref<4x1x128xf32, #tpu.memory_space<vmem>>, vector<1x1x128xf32>
    %6 = vector.shape_cast %5 : vector<1x1x128xf32> to vector<1x128xf32>
    %c1_5 = arith.constant 1 : index
    %7 = memref.load %arg1[%c1_5] : memref<5xf32, #tpu.memory_space<smem>>
    %8 = vector.broadcast %7 : f32 to vector<1x128xf32>
    %9 = arith.mulf %6, %8 : vector<1x128xf32>
    %10 = arith.addf %4, %9 : vector<1x128xf32>
    %c2 = arith.constant 2 : index
    %c0_6 = arith.constant 0 : index
    %c0_7 = arith.constant 0 : index
    %11 = vector.load %arg2[%c2, %c0_6, %c0_7] : memref<4x1x128xf32, #tpu.memory_space<vmem>>, vector<1x1x128xf32>
    %12 = vector.shape_cast %11 : vector<1x1x128xf32> to vector<1x128xf32>
    %c2_8 = arith.constant 2 : index
    %13 = memref.load %arg1[%c2_8] : memref<5xf32, #tpu.memory_space<smem>>
    %14 = vector.broadcast %13 : f32 to vector<1x128xf32>
    %15 = arith.mulf %12, %14 : vector<1x128xf32>
    %16 = arith.addf %10, %15 : vector<1x128xf32>
    %c3 = arith.constant 3 : index
    %c0_9 = arith.constant 0 : index
    %c0_10 = arith.constant 0 : index
    %17 = vector.load %arg2[%c3, %c0_9, %c0_10] : memref<4x1x128xf32, #tpu.memory_space<vmem>>, vector<1x1x128xf32>
    %18 = vector.shape_cast %17 : vector<1x1x128xf32> to vector<1x128xf32>
    %c3_11 = arith.constant 3 : index
    %19 = memref.load %arg1[%c3_11] : memref<5xf32, #tpu.memory_space<smem>>
    %20 = vector.broadcast %19 : f32 to vector<1x128xf32>
    %21 = arith.mulf %18, %20 : vector<1x128xf32>
    %22 = arith.addf %16, %21 : vector<1x128xf32>
    %c4 = arith.constant 4 : index
    %23 = memref.load %arg1[%c4] : memref<5xf32, #tpu.memory_space<smem>>
    %24 = vector.broadcast %23 : f32 to vector<1x128xf32>
    %25 = arith.addf %22, %24 : vector<1x128xf32>
    %c0_12 = arith.constant 0 : index
    %c0_13 = arith.constant 0 : index
    %26 = vector.load %arg3[%c0_12, %c0_13] : memref<1x128xf32, #tpu.memory_space<vmem>>, vector<1x128xf32>
    tpu.vector_store %arg3[%c0_12, %c0_13], %25 {strides = array<i32>} : memref<1x128xf32, #tpu.memory_space<vmem>>, vector<1x128xf32>,
    return
  }
  func.func @transform_0(%arg0: i32) -> i32 {
    %c0_i32 = arith.constant 0 : i32
    %c0_i32_0 = arith.constant 0 : i32
    return %c0_i32 : i32
  }
  func.func @transform_1(%arg0: i32) -> (i32, i32, i32) {
    %c0_i32 = arith.constant 0 : i32
    %c0_i32_0 = arith.constant 0 : i32
    %c0_i32_1 = arith.constant 0 : i32
    return %c0_i32, %arg0, %c0_i32_0 : i32, i32, i32
  }
  func.func @transform_2(%arg0: i32) -> (i32, i32) {
    %c0_i32 = arith.constant 0 : i32
    %c0_i32_0 = arith.constant 0 : i32
    return %arg0, %c0_i32 : i32, i32
  }
}

</mosaic_0001>

<bundles_post_ra>
// kernel: tpu_custom_call.1
= control target key start
LH: loop header
LB: loop body
LE: loop exit
PB: predicated region body
PF: predicated region fallthrough
CT: control target
= control target key end

     0   :  { %7 = vsyncpa [#allocation5], 0  ;;  %s189_s0 = inlined_call_operand.hbm [shape: f32[5], index: 0, kind: input, shape index: {}]   ;;  %s190_s1 = inlined_call_operand.hbm [shape: f32[4,1,128], index: 1, kind: input, shape index: {}]   ;;  %s191_s2 = inlined_call_operand.hbm [shape: f32[1,128], index: 2, kind: output, shape index: {}]  }
   0x1   :  { %8 = vsyncpa [#allocation3], 0 }
   0x2   :  { %9 = vsyncpa [#allocation4], 0  ;;  %s15_s11 = sshll.u32 %s189_s0, 4  ;;  %s23_s14 = sshll.u32 %s190_s1, 4  ;;  %s16_s11 = int_to_ptr.hbm [resolvable:$true] %s15_s11  ;;  %s24_s14 = int_to_ptr.hbm [resolvable:$true] %s23_s14 }
   0x3   :  { %s160_s15 = smov [#allocation2]   ;;  %s161_s16 = smov [#allocation6]  }
   0x4   :  { %18 = dma.hbm_to_smem %s16_s11, 16, %s160_s15, [#allocation5]  }
   0x5   :  { %s25_s17 = sshll.u32 %s161_s16, 4  ;;  %s162_s18 = smov 16   ;;  %s26_s17 = int_to_ptr.vmem [resolvable:$true] %s25_s17 }
   0x6   :  { %s163_s19 = smov 1  }
   0x7   :  { %31 = dma.hbm_to_vmem [thread:$0]  %s24_s14, 64, %s26_s17, [#allocation3], %s162_s18, %s162_s18, %s163_s19  }
   0x8   :  { %154 = dma.done.wait [#allocation5], 16  }
   0x9   :  { %155 = vsyncadd [#allocation5], 4294967280 }
   0xa   :  { %156 = dma.done.wait [#allocation3], 64  }
   0xb   :  { %157 = vsyncadd [#allocation3], 4294967232 }
   0xc   :  { %40 = sfence }
   0xd   :  { %s42_s0 = sld [smem:[#allocation2]]  ;;  %v41_v0 = vld [vmem:[#allocation6] sm:$0x1]  ;;  %v46_v1 = vld [vmem:[#allocation6 + $0x1] sm:$0x1]  ;;  %s164_s23 = smov [#allocation7]  }
   0xe   :  { %s85_s20 = sld [smem:[#allocation2 + $0x1]]  ;;  %v52_v3 = vld [vmem:[#allocation6 + $0x2] sm:$0x1]  ;;  %v58_v6 = vld [vmem:[#allocation6 + $0x3] sm:$0x1]  ;;  %s72_s24 = sshll.u32 %s164_s23, 4  ;;  %s73_s24 = int_to_ptr.vmem [resolvable:$true] %s72_s24 }
   0xf   :  { %s86_s21 = sld [smem:[#allocation2 + $0x2]]  ;;  %s74_s27 = sshll.u32 %s191_s2, 4  ;;  %s75_s27 = int_to_ptr.hbm [resolvable:$true] %s74_s27 }
  0x10   :  { %s87_s22 = sld [smem:[#allocation2 + $0x3]] }
  0x11   :  { %s88_s1 = sld [smem:[#allocation2 + $0x4]] }
  0x13   :  { %v43_v2 = vstv %s42_s0 }
  0x14   :  { %v44_v4 = vmul.f32 %v43_v2, %v41_v0  ;;  %v48_v5 = vstv %s85_s20 }
  0x15   :  { %v49_v7 = vmul.f32 %v48_v5, %v46_v1  ;;  %v54_v8 = vstv %s86_s21 }
  0x16   :  { %v55_v9 = vmul.f32 %v54_v8, %v52_v3  ;;  %v60_v10 = vstv %s87_s22 }
  0x17   :  { %v50_v11 = vadd.f32 %v49_v7, %v44_v4  ;;  %v61_v12 = vmul.f32 %v60_v10, %v58_v6  ;;  %v64_v14 = vstv %s88_s1 }
  0x19   :  { %v56_v13 = vadd.f32 %v55_v9, %v50_v11 }
  0x1b   :  { %v62_v15 = vadd.f32 %v61_v12, %v56_v13 }
  0x1d   :  { %v65_v16 = vadd.f32 %v64_v14, %v62_v15 }
  0x1f   :  { %66 = vst [vmem:[#allocation7] sm:$0x1] %v65_v16 }
  0x20   :  { %77 = dma.vmem_to_hbm [thread:$0]  %s73_s24, 16, %s75_s27, [#allocation4]  }
  0x21   :  { %158 = dma.done.wait [#allocation4], 16  }
  0x22   :  { %159 = vsyncadd [#allocation4], 4294967280 }
  0x23   :  { %82 = vsyncpa [#allocation3], 1 }
  0x24   :  { %83 = vsyncpa [#allocation4], 1 }
  0x25   :  { %84 = vsyncpa [#allocation5], 1 }

</bundles_post_ra>
